<compile_context>
chip_gen: v7x
topology: tpu7x:2x2x1
jax: 0.10.0
libtpu: 0.0.40
codegen_flags: <defaults>
</compile_context>

<pallas_src>
import jax
import jax.numpy as jnp
from jax.experimental import pallas as pl
from jax.experimental.pallas import tpu as pltpu

LANES = 128
ACC_ROWS = 64            # resident accumulator rows -> 8 independent vreg chains
CHUNK_ROWS = 1024        # elementwise compute chunk; keeps live intermediates small
BLOCK_ROWS_MAX = 8192    # 8192 x 128 f32 = 4 MiB per input per grid step
NUM_CORES = 2            # outer "parallel" axis: megacore split on v7x, cheap elsewhere


def _cdiv(a, b):
    return -(-a // b)


def _make_kernel(*, n, block_rows, chunk_rows, acc_rows, tiles_per_core,
                 tiles_total, full_blocks, num_cores, alpha):
    inv_denom = 1.0 / (alpha + 1e-4)
    num_chunks = block_rows // chunk_rows
    folds = chunk_rows // acc_rows
    n_full_rows = n // LANES       # rows fully inside [0, n)
    n_rem = n % LANES              # valid lanes in the last partial row
    covered = num_cores * tiles_per_core

    def kernel(pred_ref, true_ref, out_ref):
        c = pl.program_id(0)               # core / outer split
        i = pl.program_id(1)               # per-core block step
        b = c * tiles_per_core + i         # logical block index over the whole slab

        @pl.when(i == 0)
        def _():
            out_ref[...] = jnp.zeros_like(out_ref)

        def chunk_body(k, masked):
            if isinstance(k, int):
                start = k * chunk_rows
            else:
                start = pl.multiple_of(k * chunk_rows, chunk_rows)
            x = pred_ref[pl.ds(start, chunk_rows), :].astype(jnp.float32)
            t = true_ref[pl.ds(start, chunk_rows), :].astype(jnp.float32)

            # Numerically stable BCE-with-logits sharing e = exp(-|x|) with sigmoid:
            #   loss     = max(x,0) - x*t + log1p(exp(-|x|))
            #   sigmoid  = 1/(1+e) if x>=0 else e/(1+e)
            e = jnp.exp(-jnp.abs(x))
            loss = jnp.maximum(x, 0.0) - x * t + jnp.log1p(e)
            inv_1pe = pl.reciprocal(1.0 + e, approx=False)   # exact: torch.sigmoid parity
            p = jnp.where(x >= 0.0, inv_1pe, e * inv_1pe)
            af = 1.0 - jnp.exp((p - t - 1.0) * inv_denom)
            contrib = loss * af

            if masked:
                row = jax.lax.broadcasted_iota(jnp.int32, (chunk_rows, LANES), 0)
                lane = jax.lax.broadcasted_iota(jnp.int32, (chunk_rows, LANES), 1)
                grow = b * block_rows + start + row
                valid = (grow < n_full_rows) | ((grow == n_full_rows) & (lane < n_rem))
                contrib = jnp.where(valid, contrib, 0.0)

            if folds > 1:
                partial = jnp.sum(contrib.reshape(folds, acc_rows, LANES), axis=0)
            else:
                partial = contrib
            out_ref[...] += partial        # VPU adds into the resident accumulator

        def run_block(masked):
            if num_chunks == 1:
                chunk_body(0, masked)
            else:
                @pl.loop(0, num_chunks)
                def _(k):
                    chunk_body(k, masked)

        if full_blocks == tiles_total and covered == tiles_total:
            # Every issued block is fully inside [0, n): no gating, no mask.
            run_block(False)
        else:
            if full_blocks > 0:
                @pl.when(b < full_blocks)          # common case: block fully valid
                def _():
                    run_block(False)

            if tiles_total > full_blocks:
                # Ragged tail block(s): index-mask.  Blocks with b >= tiles_total are
                # clamped duplicates (2-core split, odd block count) and skip compute.
                @pl.when((b >= full_blocks) & (b < tiles_total))
                def _():
                    run_block(True)

    return kernel


def bce_blur_with_logits_loss(pred, true, alpha: float = 0.05):
    """Pallas TPU implementation of BCEBlurWithLogitsLoss.forward."""
    assert pred.shape == true.shape
    n = int(pred.size)
    if n == 0:                                   # mean of an empty tensor
        return jnp.array(jnp.nan, dtype=jnp.float32)

    flat_p = pred.reshape(-1)
    flat_t = true.reshape(-1)

    # Lane divisibility only: pad at most LANES-1 elements (padded / overshot
    # elements are index-masked in-kernel, so pad values never matter).
    rem = n % LANES
    if rem:
        pad = LANES - rem
        flat_p = jnp.pad(flat_p, (0, pad))
        flat_t = jnp.pad(flat_t, (0, pad))
    rows = flat_p.shape[0] // LANES

    # Block / chunk / accumulator geometry.
    if rows >= CHUNK_ROWS:
        block_rows = min(BLOCK_ROWS_MAX, (rows // CHUNK_ROWS) * CHUNK_ROWS)
        chunk_rows = CHUNK_ROWS
        acc_rows = ACC_ROWS
    elif rows >= ACC_ROWS:
        block_rows = (rows // ACC_ROWS) * ACC_ROWS
        chunk_rows = block_rows
        acc_rows = ACC_ROWS
    else:                                        # tiny input: one block == full array
        block_rows = rows
        chunk_rows = rows
        acc_rows = rows

    tiles_total = _cdiv(rows, block_rows)
    num_cores = 1 if tiles_total == 1 else NUM_CORES
    tiles_per_core = _cdiv(tiles_total, num_cores)
    full_blocks = n // (block_rows * LANES)      # blocks needing no tail mask

    p2 = flat_p.reshape(rows, LANES)
    t2 = flat_t.reshape(rows, LANES)

    needs_clamp = num_cores * tiles_per_core > tiles_total

    def in_map(c, i):
        b = c * tiles_per_core + i
        if needs_clamp:
            # Duplicated trailing block re-maps to the last real block; its
            # compute is fully gated off in the kernel.
            b = jnp.minimum(b, tiles_total - 1)
        return (b, 0)

    kernel = _make_kernel(
        n=n, block_rows=block_rows, chunk_rows=chunk_rows, acc_rows=acc_rows,
        tiles_per_core=tiles_per_core, tiles_total=tiles_total,
        full_blocks=full_blocks, num_cores=num_cores, alpha=alpha)

    partials = pl.pallas_call(
        kernel,
        out_shape=jax.ShapeDtypeStruct((num_cores, acc_rows, LANES), jnp.float32),
        grid_spec=pltpu.PrefetchScalarGridSpec(
            num_scalar_prefetch=0,
            grid=(num_cores, tiles_per_core),
            in_specs=[
                pl.BlockSpec((block_rows, LANES), in_map),
                pl.BlockSpec((block_rows, LANES), in_map),
            ],
            out_specs=pl.BlockSpec((None, acc_rows, LANES), lambda c, i: (c, 0, 0)),
        ),
        compiler_params=pltpu.CompilerParams(
            dimension_semantics=("parallel", "arbitrary"),
            # 2 inputs x 2 buffers x 4 MiB blocks + chunked f32 intermediates;
            # explicit limit also lifts v5e's 16 MiB scoped default.
            vmem_limit_bytes=48 * 1024 * 1024,
        ),
    )(p2, t2)

    # Tiny final cross-lane reduce + mean on a (num_cores, acc_rows, 128) array.
    return jnp.sum(partials) / n


def _reference(pred, true, alpha=0.05):
    x = pred.astype(jnp.float32)
    t = true.astype(jnp.float32)
    loss = jnp.maximum(x, 0.0) - x * t + jnp.log1p(jnp.exp(-jnp.abs(x)))
    p = jax.nn.sigmoid(x)
    dx = p - t
    af = 1.0 - jnp.exp((dx - 1.0) / (alpha + 1e-4))
    return jnp.mean(loss * af)


if __name__ == "__main__":
    key = jax.random.PRNGKey(0)
    k1, k2, k3, k4, k5, k6 = jax.random.split(key, 6)

    # NCHW logits and binary targets, small shape consistent with the module.
    pred = jax.random.normal(k1, (2, 4, 16, 16), dtype=jnp.float32)
    true = (jax.random.uniform(k2, (2, 4, 16, 16)) > 0.5).astype(jnp.float32)
    out = jax.block_until_ready(bce_blur_with_logits_loss(pred, true, alpha=0.05))
    ref = _reference(pred, true, alpha=0.05)
    assert jnp.allclose(out, ref, rtol=1e-5, atol=1e-6), (out, ref)

    # Ragged (non lane-divisible) shape exercises the in-kernel mask path.
    pred2 = jax.random.normal(k3, (3, 5, 7, 11), dtype=jnp.float32)
    true2 = (jax.random.uniform(k4, (3, 5, 7, 11)) > 0.5).astype(jnp.float32)
    out2 = jax.block_until_ready(bce_blur_with_logits_loss(pred2, true2, alpha=0.05))
    ref2 = _reference(pred2, true2, alpha=0.05)
    assert jnp.allclose(out2, ref2, rtol=1e-5, atol=1e-6), (out2, ref2)

    # Multi-block case exercising the 2-core split, chunk loop and tail block.
    pred3 = jax.random.normal(k5, (4, 3, 160, 160), dtype=jnp.float32)
    true3 = (jax.random.uniform(k6, (4, 3, 160, 160)) > 0.5).astype(jnp.float32)
    out3 = jax.block_until_ready(bce_blur_with_logits_loss(pred3, true3, alpha=0.05))
    ref3 = _reference(pred3, true3, alpha=0.05)
    assert jnp.allclose(out3, ref3, rtol=1e-5, atol=1e-6), (out3, ref3)

    print("KERNEL_OK")
</pallas_src>

<mosaic_0001>
module attributes {stable_mosaic.version = 11 : i64} {
  func.func @kernel(%arg0: i32, %arg1: i32, %arg2: memref<16x128xf32, #tpu.memory_space<vmem>>, %arg3: memref<16x128xf32, #tpu.memory_space<vmem>>, %arg4: memref<1x16x128xf32, #tpu.memory_space<vmem>>) attributes {dimension_semantics = [#tpu.dimension_semantics<parallel>, #tpu.dimension_semantics<arbitrary>], iteration_bounds = array<i64: 1, 1>, scalar_prefetch = 0 : i64, scratch_operands = 0 : i64, tpu.core_type = #tpu.core_type<tc>, window_params = [{transform_indices = @transform_0, window_bounds = array<i64: 16, 128>}, {transform_indices = @transform_1, window_bounds = array<i64: 16, 128>}, {transform_indices = @transform_2, window_bounds = array<i64: 1, 16, 128>}]} {
    %c0_i32 = arith.constant 0 : i32
    %0 = arith.cmpi eq, %arg1, %c0_i32 : i32
    %1 = arith.extui %0 : i1 to i32
    %c0_i32_0 = arith.constant 0 : i32
    %2 = arith.cmpi ne, %1, %c0_i32_0 : i32
    scf.if %2 {
      %cst_16 = arith.constant 0.000000e+00 : f32
      %37 = vector.broadcast %cst_16 : f32 to vector<16x128xf32>
      %c0_17 = arith.constant 0 : index
      %c0_18 = arith.constant 0 : index
      %c0_19 = arith.constant 0 : index
      %38 = vector.load %arg4[%c0_17, %c0_18, %c0_19] : memref<1x16x128xf32, #tpu.memory_space<vmem>>, vector<1x16x128xf32>
      %39 = vector.shape_cast %38 : vector<1x16x128xf32> to vector<16x128xf32>
      %40 = vector.shape_cast %37 : vector<16x128xf32> to vector<1x16x128xf32>
      tpu.vector_store %arg4[%c0_17, %c0_18, %c0_19], %40 {strides = array<i32>} : memref<1x16x128xf32, #tpu.memory_space<vmem>>, vector<1x16x128xf32>,
    } else {
    }
    %c0 = arith.constant 0 : index
    %c0_1 = arith.constant 0 : index
    %3 = vector.load %arg2[%c0, %c0_1] : memref<16x128xf32, #tpu.memory_space<vmem>>, vector<16x128xf32>
    %c0_2 = arith.constant 0 : index
    %c0_3 = arith.constant 0 : index
    %4 = vector.load %arg3[%c0_2, %c0_3] : memref<16x128xf32, #tpu.memory_space<vmem>>, vector<16x128xf32>
    %5 = math.absf %3 : vector<16x128xf32>
    %cst = arith.constant 0.000000e+00 : f32
    %6 = vector.broadcast %cst : f32 to vector<16x128xf32>
    %7 = arith.subf %6, %5 : vector<16x128xf32>
    %8 = math.exp %7 : vector<16x128xf32>
    %cst_4 = arith.constant 0.000000e+00 : f32
    %9 = vector.broadcast %cst_4 : f32 to vector<16x128xf32>
    %10 = arith.maximumf %3, %9 : vector<16x128xf32>
    %11 = arith.mulf %3, %4 : vector<16x128xf32>
    %12 = arith.subf %10, %11 : vector<16x128xf32>
    %13 = math.log1p %8 : vector<16x128xf32>
    %14 = arith.addf %12, %13 : vector<16x128xf32>
    %cst_5 = arith.constant 1.000000e+00 : f32
    %15 = vector.broadcast %cst_5 : f32 to vector<16x128xf32>
    %16 = arith.addf %15, %8 : vector<16x128xf32>
    %17 = tpu.reciprocal %16 : vector<16x128xf32> -> vector<16x128xf32>
    %cst_6 = arith.constant 0.000000e+00 : f32
    %18 = vector.broadcast %cst_6 : f32 to vector<16x128xf32>
    %19 = arith.cmpf oge, %3, %18 : vector<16x128xf32>
    %20 = arith.mulf %8, %17 : vector<16x128xf32>
    %21 = arith.select %19, %17, %20 : vector<16x128xi1>, vector<16x128xf32>
    %22 = arith.subf %21, %4 : vector<16x128xf32>
    %cst_7 = arith.constant 1.000000e+00 : f32
    %23 = vector.broadcast %cst_7 : f32 to vector<16x128xf32>
    %24 = arith.subf %22, %23 : vector<16x128xf32>
    %cst_8 = arith.constant 19.9600792 : f32
    %25 = vector.broadcast %cst_8 : f32 to vector<16x128xf32>
    %26 = arith.mulf %24, %25 : vector<16x128xf32>
    %27 = math.exp %26 : vector<16x128xf32>
    %cst_9 = arith.constant 1.000000e+00 : f32
    %28 = vector.broadcast %cst_9 : f32 to vector<16x128xf32>
    %29 = arith.subf %28, %27 : vector<16x128xf32>
    %30 = arith.mulf %14, %29 : vector<16x128xf32>
    %c0_10 = arith.constant 0 : index
    %c0_11 = arith.constant 0 : index
    %c0_12 = arith.constant 0 : index
    %31 = vector.load %arg4[%c0_10, %c0_11, %c0_12] : memref<1x16x128xf32, #tpu.memory_space<vmem>>, vector<1x16x128xf32>
    %32 = vector.shape_cast %31 : vector<1x16x128xf32> to vector<16x128xf32>
    %33 = arith.addf %32, %30 : vector<16x128xf32>
    %c0_13 = arith.constant 0 : index
    %c0_14 = arith.constant 0 : index
    %c0_15 = arith.constant 0 : index
    %34 = vector.load %arg4[%c0_13, %c0_14, %c0_15] : memref<1x16x128xf32, #tpu.memory_space<vmem>>, vector<1x16x128xf32>
    %35 = vector.shape_cast %34 : vector<1x16x128xf32> to vector<16x128xf32>
    %36 = vector.shape_cast %33 : vector<16x128xf32> to vector<1x16x128xf32>
    tpu.vector_store %arg4[%c0_13, %c0_14, %c0_15], %36 {strides = array<i32>} : memref<1x16x128xf32, #tpu.memory_space<vmem>>, vector<1x16x128xf32>,
    return
  }
  func.func @transform_0(%arg0: i32, %arg1: i32) -> (i32, i32) {
    %c1_i32 = arith.constant 1 : i32
    %0 = arith.muli %arg0, %c1_i32 : i32
    %1 = arith.addi %0, %arg1 : i32
    %c0_i32 = arith.constant 0 : i32
    %c0_i32_0 = arith.constant 0 : i32
    return %1, %c0_i32 : i32, i32
  }
  func.func @transform_1(%arg0: i32, %arg1: i32) -> (i32, i32) {
    %c1_i32 = arith.constant 1 : i32
    %0 = arith.muli %arg0, %c1_i32 : i32
    %1 = arith.addi %0, %arg1 : i32
    %c0_i32 = arith.constant 0 : i32
    %c0_i32_0 = arith.constant 0 : i32
    return %1, %c0_i32 : i32, i32
  }
  func.func @transform_2(%arg0: i32, %arg1: i32) -> (i32, i32, i32) {
    %c0_i32 = arith.constant 0 : i32
    %c0_i32_0 = arith.constant 0 : i32
    %c0_i32_1 = arith.constant 0 : i32
    return %arg0, %c0_i32, %c0_i32_0 : i32, i32, i32
  }
}

</mosaic_0001>

<bundles_post_ra>
// kernel: tpu_custom_call.1
= control target key start
LH: loop header
LB: loop body
LE: loop exit
PB: predicated region body
PF: predicated region fallthrough
CT: control target
= control target key end

     0   :  { %7 = vsyncpa [#allocation3], 0  ;;  %s305_s0 = inlined_call_operand.hbm [shape: f32[16,128], index: 0, kind: input, shape index: {}]   ;;  %s306_s1 = inlined_call_operand.hbm [shape: f32[16,128], index: 1, kind: input, shape index: {}]   ;;  %s307_s2 = inlined_call_operand.hbm [shape: f32[1,16,128], index: 2, kind: output, shape index: {}]  }
   0x1   :  { %8 = vsyncpa [#allocation6], 0 }
   0x2   :  { %9 = vsyncpa [#allocation4], 0  ;;  %s240_s9 = smov [#allocation2]   ;;  %s168_s13 = scalar_lea.hbm %s305_s0, 256 }
   0x3   :  { %s19_s10 = sshll.u32 %s240_s9, 4  ;;  %p169_p0 = scmp.ne.s32.totalorder %s305_s0, %s168_s13  ;;  %s20_s10 = int_to_ptr.vmem [resolvable:$true] %s19_s10 }
   0x4   :  { %p172_p1 = scmp.lt.u32.totalorder %s168_s13, %s305_s0 }
   0x6   :  { %p174_p2 = pnand %p172_p1, %p169_p0 }
   0x8   :  { %177 = shalt.err (!%p174_p2)
}
   0x9   :  { %s178_s18 = scalar_lea.vmem %s20_s10, 256  ;;  %p183_p4 = scmp.lt.s32.totalorder %s20_s10, %s20_s10 }
   0xa   :  { %p179_p3 = scmp.ne.s32.totalorder %s20_s10, %s178_s18  ;;  %p184_p5 = scmp.lt.s32.totalorder %s178_s18, %s178_s18 }
   0xc   :  { %p185_p6 = por %p184_p5, %p183_p4 }
   0xe   :  { %p186_p7 = pnand %p185_p6, %p179_p3 }
  0x10   :  { %189 = shalt.err (!%p186_p7)
}
  0x11   :  { %s241_s19 = smov 128   ;;  %s242_s20 = smov 8  }
  0x12   :  { %25 = dma.hbm_to_vmem [thread:$0]  %s305_s0, 256, %s20_s10, [#allocation3], %s241_s19, %s241_s19, %s242_s20  }
  0x13   :  { %s243_s23 = smov [#allocation5]   ;;  %s190_s27 = scalar_lea.hbm %s306_s1, 256 }
  0x14   :  { %s35_s24 = sshll.u32 %s243_s23, 4  ;;  %p191_p8 = scmp.ne.s32.totalorder %s306_s1, %s190_s27  ;;  %s36_s24 = int_to_ptr.vmem [resolvable:$true] %s35_s24 }
  0x15   :  { %p194_p9 = scmp.lt.u32.totalorder %s190_s27, %s306_s1 }
  0x17   :  { %p196_p10 = pnand %p194_p9, %p191_p8 }
  0x19   :  { %199 = shalt.err (!%p196_p10)
}
  0x1a   :  { %s200_s4 = scalar_lea.vmem %s36_s24, 256  ;;  %p205_p12 = scmp.lt.s32.totalorder %s36_s24, %s36_s24 }
  0x1b   :  { %p201_p11 = scmp.ne.s32.totalorder %s36_s24, %s200_s4  ;;  %p206_p13 = scmp.lt.s32.totalorder %s200_s4, %s200_s4 }
  0x1d   :  { %p207_p0 = por %p206_p13, %p205_p12 }
  0x1f   :  { %p208_p1 = pnand %p207_p0, %p201_p11 }
  0x21   :  { %211 = shalt.err (!%p208_p1)
}
  0x22   :  { %41 = dma.hbm_to_vmem [thread:$0]  %s306_s1, 256, %s36_s24, [#allocation6], %s241_s19, %s241_s19, %s242_s20  }
  0x23   :  { %234 = dma.done.wait [#allocation3], 256  }
  0x24   :  { %235 = vsyncadd [#allocation3], 4294967040 }
  0x25   :  { %236 = dma.done.wait [#allocation6], 256  }
  0x26   :  { %237 = vsyncadd [#allocation6], 4294967040  ;;  %v58_v0 = vld [vmem:[#allocation2] sm:$0xff]  ;;  %v59_v1 = vld [vmem:[#allocation2 + $0x8] sm:$0xff]  ;;  %s244_s1 = smov [#allocation7]  }
  0x27   :  { %v62_v2 = vand.u32 2147483647, %v58_v0  ;;  %v63_v3 = vand.u32 2147483647, %v59_v1  ;;  %vm100_vm0 = vcmp.ge.f32.partialorder %v58_v0, 0.0  ;;  %v60_v13 = vld [vmem:[#allocation5] sm:$0xff] }
  0x28   :  { %vm101_vm1 = vcmp.ge.f32.partialorder %v59_v1, 0.0  ;;  %v61_v17 = vld [vmem:[#allocation5 + $0x8] sm:$0xff]  ;;  %v70_v35 = vmax.f32 %v58_v0, 0.0  ;;  %v72_v36 = vmul.f32 %v60_v13, %v58_v0  ;;  %v71_v40 = vmax.f32 %v59_v1, 0.0  ;;  %s131_s6 = sshll.u32 %s244_s1, 4  ;;  %s132_s6 = int_to_ptr.vmem [resolvable:$true] %s131_s6 }
  0x29   :  { %v64_v4 = vsub.f32 0.0, %v62_v2  ;;  %v65_v5 = vsub.f32 0.0, %v63_v3  ;;  %v73_v41 = vmul.f32 %v61_v17, %v59_v1  ;;  %s212_s7 = scalar_lea.vmem %s132_s6, 256  ;;  %p217_p3 = scmp.lt.s32.totalorder %s132_s6, %s132_s6 }
  0x2a   :  { %v74_v44 = vsub.f32 %v70_v35, %v72_v36  ;;  %p213_p2 = scmp.ne.s32.totalorder %s132_s6, %s212_s7  ;;  %p218_p4 = scmp.lt.s32.totalorder %s212_s7, %s212_s7 }
  0x2b   :  { %v66_v6 = vmul.f32 1.442695, %v64_v4  ;;  %v68_v7 = vmul.f32 1.442695, %v65_v5  ;;  %v75_v46 = vsub.f32 %v71_v40, %v73_v41 }
  0x2c   :  { %p219_p5 = por %p218_p4, %p217_p3 }
  0x2d   :  { %152 = vpow2.f32 %v66_v6 }
  0x2e   :  { %154 = vpow2.f32 %v68_v7  ;;  %p220_p6 = pnand %p219_p5, %p213_p2 }
  0x37   :  { %v153_v8 = vpop.eup %152 }
  0x38   :  { %v155_v9 = vpop.eup %154  ;;  %v76_v10 = vadd.f32 1.0, %v153_v8  ;;  %v79_v21 = vmul.f32 -0.5, %v153_v8  ;;  %v82_v31 = vand.u32 2147483647, %v153_v8 }
  0x39   :  { %v85_v11 = vadd.f32 1.0, %v155_v9  ;;  %v88_v25 = vmul.f32 -0.5, %v155_v9  ;;  %v91_v37 = vand.u32 2147483647, %v155_v9 }
  0x3a   :  { %156 = vrcp.f32 %v76_v10  ;;  %v80_v27 = vadd.f32 1.0, %v79_v21  ;;  %vm83_vm2 = vcmp.lt.f32.partialorder %v82_v31, 0.0004427343 }
  0x3b   :  { %158 = vrcp.f32 %v85_v11  ;;  %v89_v32 = vadd.f32 1.0, %v88_v25  ;;  %vm92_vm3 = vcmp.lt.f32.partialorder %v91_v37, 0.0004427343 }
  0x3c   :  { %160 = vlog2.f32 %v76_v10  ;;  %v81_v39 = vmul.f32 %v153_v8, %v80_v27 }
  0x3d   :  { %162 = vlog2.f32 %v85_v11  ;;  %v90_v43 = vmul.f32 %v155_v9, %v89_v32 }
  0x44   :  { %v157_v12 = vpop.eup %156 }
  0x45   :  { %v102_v14 = vmul.f32 %v157_v12, %v153_v8  ;;  %v159_v15 = vpop.eup %158 }
  0x46   :  { %v103_v18 = vmul.f32 %v159_v15, %v155_v9  ;;  %v161_v30 = vpop.eup %160 }
  0x47   :  { %v104_v16 = vsel %vm100_vm0, %v157_v12, %v102_v14  ;;  %v163_v34 = vpop.eup %162  ;;  %v78_v38 = vmul.f32 0.6931472, %v161_v30 }
  0x48   :  { %v106_v19 = vsub.f32 %v104_v16, %v60_v13  ;;  %v105_v20 = vsel %vm101_vm1, %v159_v15, %v103_v18  ;;  %v87_v42 = vmul.f32 0.6931472, %v163_v34 }
  0x49   :  { %v107_v23 = vsub.f32 %v105_v20, %v61_v17  ;;  %v84_v45 = vsel %vm83_vm2, %v81_v39, %v78_v38 }
  0x4a   :  { %v144_v22 = vadd.f32 -1.0, %v106_v19  ;;  %v93_v47 = vsel %vm92_vm3, %v90_v43, %v87_v42  ;;  %v94_v48 = vadd.f32 %v84_v45, %v74_v44 }
  0x4b   :  { %v145_v26 = vadd.f32 -1.0, %v107_v23  ;;  %v95_v51 = vadd.f32 %v93_v47, %v75_v46 }
  0x4c   :  { %v110_v24 = vmul.f32 19.96008, %v144_v22 }
  0x4d   :  { %v111_v29 = vmul.f32 19.96008, %v145_v26 }
  0x4e   :  { %v112_v28 = vmul.f32 1.442695, %v110_v24 }
  0x4f   :  { %v114_v33 = vmul.f32 1.442695, %v111_v29 }
  0x50   :  { %164 = vpow2.f32 %v112_v28 }
  0x51   :  { %166 = vpow2.f32 %v114_v33 }
  0x5a   :  { %v165_v49 = vpop.eup %164 }
  0x5b   :  { %v116_v50 = vsub.f32 1.0, %v165_v49  ;;  %v167_v52 = vpop.eup %166 }
  0x5c   :  { %v117_v54 = vsub.f32 1.0, %v167_v52 }
  0x5d   :  { %v118_v53 = vmul.f32 %v116_v50, %v94_v48 }
  0x5e   :  { %v119_v55 = vmul.f32 %v117_v54, %v95_v51 }
  0x5f   :  { %124 = vst [vmem:[#allocation7] sm:$0xff] %v118_v53 }
  0x60   :  { %125 = vst [vmem:[#allocation7 + $0x8] sm:$0xff] %v119_v55 }
  0x61   :  { %223 = shalt.err (!%p220_p6)
}
  0x62   :  { %s224_s10 = scalar_lea.hbm %s307_s2, 256 }
  0x63   :  { %p225_p7 = scmp.ne.s32.totalorder %s307_s2, %s224_s10  ;;  %p228_p8 = scmp.lt.u32.totalorder %s224_s10, %s307_s2 }
  0x65   :  { %p230_p9 = pnand %p228_p8, %p225_p7 }
  0x67   :  { %233 = shalt.err (!%p230_p9)
}
  0x68   :  { %137 = dma.vmem_to_hbm [thread:$0]  %s132_s6, 256, %s307_s2, [#allocation4], %s241_s19, %s241_s19, %s242_s20  }
  0x69   :  { %238 = dma.done.wait [#allocation4], 256  }
  0x6a   :  { %239 = vsyncadd [#allocation4], 4294967040 }
  0x6b   :  { %141 = vsyncpa [#allocation3], 1 }
  0x6c   :  { %142 = vsyncpa [#allocation6], 1 }
  0x6d   :  { %143 = vsyncpa [#allocation4], 1 }

</bundles_post_ra>
